<compile_context>
chip_gen: v6e
topology: v6e:2x2x1
jax: 0.10.0
libtpu: 0.0.40
codegen_flags: <defaults>
</compile_context>

<pallas_src>
import functools

import jax
import jax.numpy as jnp
from jax.experimental import pallas as pl
from jax.experimental.pallas import tpu as pltpu


def _focal_loss_kernel(logits_ref, targets_ref, out_ref, *,
                       gamma, C, ROWS, TH, LW, CH):
    """One grid step: focal-loss partial sum over a (TH, LW) tile of one image.

    logits_ref : (C, TH, LW)  logits block, class axis leading (lane-dense work)
    targets_ref: (TH, LW)     integer labels block (native dtype)
    out_ref    : (1, LW)      f32 partial sum over the tile's rows
    """
    h = pl.program_id(1)
    n_chunks = TH // CH
    need_mask = (ROWS % TH) != 0          # static: only the last h-tile pads rows

    def chunk_focal(row_start, t):
        # Numerically stable log-softmax over the class axis for a (CH, LW)
        # register-resident chunk; class reduction is a short unrolled loop.
        sl = pl.ds(row_start, CH)
        m = logits_ref[0, sl, :].astype(jnp.float32)
        for c in range(1, C):
            m = jnp.maximum(m, logits_ref[c, sl, :].astype(jnp.float32))
        sum_exp = jnp.zeros_like(m)
        tgt_z = jnp.zeros_like(m)
        for c in range(C):
            zc = logits_ref[c, sl, :].astype(jnp.float32) - m
            sum_exp = sum_exp + jnp.exp(zc)
            tgt_z = jnp.where(t == c, zc, tgt_z)          # one-hot gather
        ce = jnp.log(sum_exp) - tgt_z                     # -log p_target
        pt = jnp.exp(-ce)
        one_m_pt = jnp.maximum(1.0 - pt, 0.0)             # clamp rounding noise
        g = float(gamma)
        if g == 2.0:
            wgt = one_m_pt * one_m_pt                     # single VPU mul, no pow
        elif g == 1.0:
            wgt = one_m_pt
        elif g == 0.0:
            wgt = jnp.ones_like(one_m_pt)
        elif g.is_integer() and g > 0:
            wgt = one_m_pt ** int(g)                      # lax.integer_pow
        else:
            wgt = one_m_pt ** g
        return wgt * ce                                   # alpha applied in wrapper

    if need_mask:
        row_iota = jax.lax.broadcasted_iota(jnp.int32, (CH, LW), 0)
        rows_left = ROWS - h * TH                         # >= TH except last tile

    def masked(row_start, focal):
        if not need_mask:
            return focal
        valid = (row_iota + row_start) < rows_left
        return jnp.where(valid, focal, 0.0)

    # TODO(synk): no ignore_index support (PyTorch default -100 / 255 labels).
    if n_chunks == 1:
        t = targets_ref[...]
        focal = masked(0, chunk_focal(0, t))
        out_ref[...] = jnp.sum(focal, axis=0, keepdims=True)
    else:
        def body(i, acc):
            start = pl.multiple_of(i * CH, CH)
            t = targets_ref[pl.ds(start, CH), :]
            return acc + masked(start, chunk_focal(start, t))

        acc = jax.lax.fori_loop(0, n_chunks, body,
                                jnp.zeros((CH, LW), jnp.float32),
                                unroll=(n_chunks <= 4))
        out_ref[...] = jnp.sum(acc, axis=0, keepdims=True)


def _vmem_params():
    """Generation-aware (budget, vmem_limit_bytes): roomy on 128 MiB VMEM parts
    (v5e/v6e), conservative on 64 MiB parts (v7x)."""
    phys = 64 * 1024 * 1024
    try:
        phys = int(pltpu.get_tpu_info().vmem_capacity_bytes)
    except Exception:
        pass
    if phys >= 128 * 1024 * 1024:
        return 40 * 1024 * 1024, 64 * 1024 * 1024, phys
    return 20 * 1024 * 1024, 32 * 1024 * 1024, phys


def _spatial_layout(H, W):
    """Pick a lane-dense (ROWS, LW) view of the flattened H*W axis (free reshape).
    Prefer large lane widths while keeping >= 8 sublane rows; fall back to (H, W)."""
    S = H * W
    for rows_floor in (8, 1):
        for lw in (512, 256, 128):
            if S % lw == 0 and S // lw >= rows_floor:
                return S // lw, lw, True
    return H, W, False


def focal_loss(inputs, targets, *, alpha=0.25, gamma=2.0, reduction="mean"):
    """Focal loss matching the PyTorch module (defaults alpha=0.25, gamma=2, mean).

    inputs:  (N, C, H, W) float logits (NCHW, consumed directly)
    targets: (N, H, W) integer class indices (kept in their native dtype)
    """
    N, C, H, W = inputs.shape
    assert targets.shape == (N, H, W)
    if jnp.dtype(targets.dtype).itemsize > 4:    # only demote 64-bit labels
        targets = targets.astype(jnp.int32)

    ROWS, LW, flat = _spatial_layout(H, W)
    if flat:
        logits = inputs.reshape(N, C, ROWS, LW)  # free trailing-dim reshape
        labels = targets.reshape(N, ROWS, LW)
    else:
        logits, labels = inputs, targets

    isz = jnp.dtype(logits.dtype).itemsize
    tsz = jnp.dtype(labels.dtype).itemsize
    vmem_budget, vmem_limit, phys = _vmem_params()

    if ROWS <= 8:
        TH = ROWS
    else:
        # Largest sublane-aligned row tile whose double-buffered logits+targets
        # blocks fit the budget.
        bytes_per_row = LW * (2 * C * isz + 2 * tsz) + 64
        th_max = max(8, vmem_budget // bytes_per_row)
        TH = max(8, (min(ROWS, th_max) // 8) * 8)
        # TODO(synk): lane-axis tiling fallback for extreme C*LW where even an
        # 8-row double-buffered tile exceeds the VMEM limit.
    CH = min(8, TH)
    nh = pl.cdiv(ROWS, TH)

    # Make sure the compiler's scoped-VMEM limit covers the live footprint.
    live_bytes = 2 * TH * LW * (C * isz + tsz) + 2 * LW * 4 + (1 << 20)
    vmem_limit = max(vmem_limit, min(phys, live_bytes))

    kernel = functools.partial(_focal_loss_kernel, gamma=float(gamma),
                               C=C, ROWS=ROWS, TH=TH, LW=LW, CH=CH)

    partials = pl.pallas_call(
        kernel,
        out_shape=jax.ShapeDtypeStruct((N, nh, 1, LW), jnp.float32),
        grid_spec=pltpu.PrefetchScalarGridSpec(
            num_scalar_prefetch=0,
            grid=(N, nh),
            in_specs=[
                pl.BlockSpec((None, C, TH, LW), lambda n, h: (n, 0, h, 0)),
                pl.BlockSpec((None, TH, LW), lambda n, h: (n, h, 0)),
            ],
            out_specs=pl.BlockSpec((None, None, 1, LW),
                                   lambda n, h: (n, h, 0, 0)),
        ),
        compiler_params=pltpu.CompilerParams(
            dimension_semantics=("parallel", "parallel"),
            vmem_limit_bytes=vmem_limit,
        ),
    )(logits, labels)

    total = jnp.sum(partials) * jnp.float32(alpha)   # alpha applied once, post-reduce
    if reduction == "mean":
        return total / jnp.float32(N * H * W)
    if reduction == "sum":
        return total
    # TODO(synk): reduction='none' (per-element focal map output) not implemented.
    raise NotImplementedError("reduction must be 'mean' or 'sum'")


def _focal_loss_ref(inputs, targets, alpha=0.25, gamma=2.0):
    """Pure-JAX reference matching F.cross_entropy(..., reduction='none') + focal."""
    logits = jnp.transpose(inputs, (0, 2, 3, 1)).astype(jnp.float32)   # NHWC
    m = jnp.max(logits, axis=-1, keepdims=True)
    lse = (m + jnp.log(jnp.sum(jnp.exp(logits - m), axis=-1, keepdims=True)))[..., 0]
    tgt_logit = jnp.take_along_axis(
        logits, targets[..., None].astype(jnp.int32), axis=-1)[..., 0]
    ce = lse - tgt_logit
    pt = jnp.exp(-ce)
    return jnp.mean(alpha * (1.0 - pt) ** gamma * ce)


if __name__ == "__main__":
    key = jax.random.PRNGKey(0)

    test_shapes = [
        (2, 4, 16, 16),    # lane-dense flattened layout, single row chunk
        (1, 3, 128, 64),   # flattened layout, multi-chunk inner fori_loop
        (2, 5, 20, 24),    # native (H, W) fallback + padded last row tile
    ]
    for idx, (N, C, H, W) in enumerate(test_shapes):
        k1, k2 = jax.random.split(jax.random.fold_in(key, idx))
        inputs = jax.random.normal(k1, (N, C, H, W), dtype=jnp.float32)
        targets = jax.random.randint(k2, (N, H, W), 0, C, dtype=jnp.int32)

        loss = jax.block_until_ready(focal_loss(inputs, targets,
                                                alpha=0.25, gamma=2.0))
        ref = _focal_loss_ref(inputs, targets, alpha=0.25, gamma=2.0)
        assert jnp.allclose(loss, ref, rtol=1e-5, atol=1e-6), (idx, loss, ref)

    print("KERNEL_OK")
</pallas_src>

<mosaic_0001>
module attributes {stable_mosaic.version = 11 : i64} {
  func.func @_focal_loss_kernel(%arg0: i32, %arg1: i32, %arg2: memref<1x4x1x256xf32, #tpu.memory_space<vmem>>, %arg3: memref<1x1x256xi32, #tpu.memory_space<vmem>>, %arg4: memref<1x1x1x256xf32, #tpu.memory_space<vmem>>) attributes {dimension_semantics = [#tpu.dimension_semantics<parallel>, #tpu.dimension_semantics<parallel>], iteration_bounds = array<i64: 2, 1>, scalar_prefetch = 0 : i64, scratch_operands = 0 : i64, tpu.core_type = #tpu.core_type<tc>, window_params = [{transform_indices = @transform_0, window_bounds = array<i64: 1, 4, 1, 256>}, {transform_indices = @transform_1, window_bounds = array<i64: 1, 1, 256>}, {transform_indices = @transform_2, window_bounds = array<i64: 1, 1, 1, 256>}]} {
    %c0 = arith.constant 0 : index
    %c0_0 = arith.constant 0 : index
    %c0_1 = arith.constant 0 : index
    %0 = vector.load %arg3[%c0, %c0_0, %c0_1] : memref<1x1x256xi32, #tpu.memory_space<vmem>>, vector<1x1x256xi32>
    %1 = vector.shape_cast %0 : vector<1x1x256xi32> to vector<1x256xi32>
    %c0_2 = arith.constant 0 : index
    %c0_3 = arith.constant 0 : index
    %c0_4 = arith.constant 0 : index
    %c0_5 = arith.constant 0 : index
    %2 = vector.load %arg2[%c0_2, %c0_3, %c0_4, %c0_5] : memref<1x4x1x256xf32, #tpu.memory_space<vmem>>, vector<1x1x1x256xf32>
    %3 = vector.shape_cast %2 : vector<1x1x1x256xf32> to vector<1x256xf32>
    %c0_6 = arith.constant 0 : index
    %c1 = arith.constant 1 : index
    %c0_7 = arith.constant 0 : index
    %c0_8 = arith.constant 0 : index
    %4 = vector.load %arg2[%c0_6, %c1, %c0_7, %c0_8] : memref<1x4x1x256xf32, #tpu.memory_space<vmem>>, vector<1x1x1x256xf32>
    %5 = vector.shape_cast %4 : vector<1x1x1x256xf32> to vector<1x256xf32>
    %6 = arith.maximumf %3, %5 : vector<1x256xf32>
    %c0_9 = arith.constant 0 : index
    %c2 = arith.constant 2 : index
    %c0_10 = arith.constant 0 : index
    %c0_11 = arith.constant 0 : index
    %7 = vector.load %arg2[%c0_9, %c2, %c0_10, %c0_11] : memref<1x4x1x256xf32, #tpu.memory_space<vmem>>, vector<1x1x1x256xf32>
    %8 = vector.shape_cast %7 : vector<1x1x1x256xf32> to vector<1x256xf32>
    %9 = arith.maximumf %6, %8 : vector<1x256xf32>
    %c0_12 = arith.constant 0 : index
    %c3 = arith.constant 3 : index
    %c0_13 = arith.constant 0 : index
    %c0_14 = arith.constant 0 : index
    %10 = vector.load %arg2[%c0_12, %c3, %c0_13, %c0_14] : memref<1x4x1x256xf32, #tpu.memory_space<vmem>>, vector<1x1x1x256xf32>
    %11 = vector.shape_cast %10 : vector<1x1x1x256xf32> to vector<1x256xf32>
    %12 = arith.maximumf %9, %11 : vector<1x256xf32>
    %cst = arith.constant 0.000000e+00 : f32
    %13 = vector.broadcast %cst : f32 to vector<1x256xf32>
    %cst_15 = arith.constant 0.000000e+00 : f32
    %14 = vector.broadcast %cst_15 : f32 to vector<1x256xf32>
    %c0_16 = arith.constant 0 : index
    %c0_17 = arith.constant 0 : index
    %c0_18 = arith.constant 0 : index
    %c0_19 = arith.constant 0 : index
    %15 = vector.load %arg2[%c0_16, %c0_17, %c0_18, %c0_19] : memref<1x4x1x256xf32, #tpu.memory_space<vmem>>, vector<1x1x1x256xf32>
    %16 = vector.shape_cast %15 : vector<1x1x1x256xf32> to vector<1x256xf32>
    %17 = arith.subf %16, %12 : vector<1x256xf32>
    %18 = math.exp %17 : vector<1x256xf32>
    %19 = arith.addf %13, %18 : vector<1x256xf32>
    %c0_i32 = arith.constant 0 : i32
    %20 = vector.broadcast %c0_i32 : i32 to vector<1x256xi32>
    %21 = arith.cmpi eq, %1, %20 : vector<1x256xi32>
    %22 = arith.select %21, %17, %14 : vector<1x256xi1>, vector<1x256xf32>
    %c0_20 = arith.constant 0 : index
    %c1_21 = arith.constant 1 : index
    %c0_22 = arith.constant 0 : index
    %c0_23 = arith.constant 0 : index
    %23 = vector.load %arg2[%c0_20, %c1_21, %c0_22, %c0_23] : memref<1x4x1x256xf32, #tpu.memory_space<vmem>>, vector<1x1x1x256xf32>
    %24 = vector.shape_cast %23 : vector<1x1x1x256xf32> to vector<1x256xf32>
    %25 = arith.subf %24, %12 : vector<1x256xf32>
    %26 = math.exp %25 : vector<1x256xf32>
    %27 = arith.addf %19, %26 : vector<1x256xf32>
    %c1_i32 = arith.constant 1 : i32
    %28 = vector.broadcast %c1_i32 : i32 to vector<1x256xi32>
    %29 = arith.cmpi eq, %1, %28 : vector<1x256xi32>
    %30 = arith.select %29, %25, %22 : vector<1x256xi1>, vector<1x256xf32>
    %c0_24 = arith.constant 0 : index
    %c2_25 = arith.constant 2 : index
    %c0_26 = arith.constant 0 : index
    %c0_27 = arith.constant 0 : index
    %31 = vector.load %arg2[%c0_24, %c2_25, %c0_26, %c0_27] : memref<1x4x1x256xf32, #tpu.memory_space<vmem>>, vector<1x1x1x256xf32>
    %32 = vector.shape_cast %31 : vector<1x1x1x256xf32> to vector<1x256xf32>
    %33 = arith.subf %32, %12 : vector<1x256xf32>
    %34 = math.exp %33 : vector<1x256xf32>
    %35 = arith.addf %27, %34 : vector<1x256xf32>
    %c2_i32 = arith.constant 2 : i32
    %36 = vector.broadcast %c2_i32 : i32 to vector<1x256xi32>
    %37 = arith.cmpi eq, %1, %36 : vector<1x256xi32>
    %38 = arith.select %37, %33, %30 : vector<1x256xi1>, vector<1x256xf32>
    %c0_28 = arith.constant 0 : index
    %c3_29 = arith.constant 3 : index
    %c0_30 = arith.constant 0 : index
    %c0_31 = arith.constant 0 : index
    %39 = vector.load %arg2[%c0_28, %c3_29, %c0_30, %c0_31] : memref<1x4x1x256xf32, #tpu.memory_space<vmem>>, vector<1x1x1x256xf32>
    %40 = vector.shape_cast %39 : vector<1x1x1x256xf32> to vector<1x256xf32>
    %41 = arith.subf %40, %12 : vector<1x256xf32>
    %42 = math.exp %41 : vector<1x256xf32>
    %43 = arith.addf %35, %42 : vector<1x256xf32>
    %c3_i32 = arith.constant 3 : i32
    %44 = vector.broadcast %c3_i32 : i32 to vector<1x256xi32>
    %45 = arith.cmpi eq, %1, %44 : vector<1x256xi32>
    %46 = arith.select %45, %41, %38 : vector<1x256xi1>, vector<1x256xf32>
    %47 = math.log %43 : vector<1x256xf32>
    %48 = arith.subf %47, %46 : vector<1x256xf32>
    %cst_32 = arith.constant 0.000000e+00 : f32
    %49 = vector.broadcast %cst_32 : f32 to vector<1x256xf32>
    %50 = arith.subf %49, %48 : vector<1x256xf32>
    %51 = math.exp %50 : vector<1x256xf32>
    %cst_33 = arith.constant 1.000000e+00 : f32
    %52 = vector.broadcast %cst_33 : f32 to vector<1x256xf32>
    %53 = arith.subf %52, %51 : vector<1x256xf32>
    %cst_34 = arith.constant 0.000000e+00 : f32
    %54 = vector.broadcast %cst_34 : f32 to vector<1x256xf32>
    %55 = arith.maximumf %53, %54 : vector<1x256xf32>
    %56 = arith.mulf %55, %55 : vector<1x256xf32>
    %57 = arith.mulf %56, %48 : vector<1x256xf32>
    %cst_35 = arith.constant dense<0.000000e+00> : vector<256xf32>
    %58 = vector.multi_reduction <add>, %57, %cst_35 [0] : vector<1x256xf32> to vector<256xf32>
    %59 = vector.shape_cast %58 : vector<256xf32> to vector<1x256xf32>
    %c0_36 = arith.constant 0 : index
    %c0_37 = arith.constant 0 : index
    %c0_38 = arith.constant 0 : index
    %c0_39 = arith.constant 0 : index
    %60 = vector.load %arg4[%c0_36, %c0_37, %c0_38, %c0_39] : memref<1x1x1x256xf32, #tpu.memory_space<vmem>>, vector<1x1x1x256xf32>
    %61 = vector.shape_cast %60 : vector<1x1x1x256xf32> to vector<1x256xf32>
    %62 = vector.shape_cast %59 : vector<1x256xf32> to vector<1x1x1x256xf32>
    tpu.vector_store %arg4[%c0_36, %c0_37, %c0_38, %c0_39], %62 {strides = array<i32>} : memref<1x1x1x256xf32, #tpu.memory_space<vmem>>, vector<1x1x1x256xf32>,
    return
  }
  func.func @transform_0(%arg0: i32, %arg1: i32) -> (i32, i32, i32, i32) {
    %c0_i32 = arith.constant 0 : i32
    %c0_i32_0 = arith.constant 0 : i32
    %c0_i32_1 = arith.constant 0 : i32
    return %arg0, %c0_i32, %arg1, %c0_i32_0 : i32, i32, i32, i32
  }
  func.func @transform_1(%arg0: i32, %arg1: i32) -> (i32, i32, i32) {
    %c0_i32 = arith.constant 0 : i32
    %c0_i32_0 = arith.constant 0 : i32
    return %arg0, %arg1, %c0_i32 : i32, i32, i32
  }
  func.func @transform_2(%arg0: i32, %arg1: i32) -> (i32, i32, i32, i32) {
    %c0_i32 = arith.constant 0 : i32
    %c0_i32_0 = arith.constant 0 : i32
    %c0_i32_1 = arith.constant 0 : i32
    return %arg0, %arg1, %c0_i32, %c0_i32_0 : i32, i32, i32, i32
  }
}

</mosaic_0001>

<bundles_post_ra>
// kernel: tpu_custom_call.1
= control target key start
LH: loop header
LB: loop body
LE: loop exit
PB: predicated region body
PF: predicated region fallthrough
CT: control target
= control target key end

     0   :  { %7 = vsyncpa [#allocation3], 0  ;;  %s834_s0 = inlined_call_operand.hbm [shape: f32[2,4,1,256], index: 0, kind: input, shape index: {}]   ;;  %s835_s1 = inlined_call_operand.hbm [shape: s32[2,1,256], index: 1, kind: input, shape index: {}]   ;;  %s836_s2 = inlined_call_operand.hbm [shape: f32[2,1,1,256], index: 2, kind: output, shape index: {}]  }
   0x1   :  { %9 = vsyncpa [#allocation3 + $0x1], 0 }
   0x2   :  { %10 = vsyncpa [#allocation6], 0 }
   0x3   :  { %12 = vsyncpa [#allocation6 + $0x1], 0 }
   0x4   :  { %13 = vsyncpa [#allocation4], 0 }
   0x5   :  { %15 = vsyncpa [#allocation4 + $0x1], 0  ;;  %s668_s9 = smov 0   ;;  %s670_s10 = smov 0  }
   0x6   :  { %s672_s11 = smov 0   ;;  %s674_s12 = smov 0  }
   0x7   :  { %s676_s13 = smov 0   ;;  %s678_s14 = smov 0  }
   0x8 LB: > { %s400_s15 = sadd.s32 4294967295, %s646_s14   ;;  %s401_s16 = sadd.s32 4294967294, %s646_s14   ;;  %s646_s14 = sphi %s678_s14, %s21_s14   ;;  %s642_s13 = sphi %s676_s13, %s848_s13   ;;  %s638_s12 = sphi %s674_s12, %s847_s12   ;;  %s634_s11 = sphi %s672_s11, %s846_s11   ;;  %s630_s10 = sphi %s670_s10, %s845_s10   ;;  %s626_s9 = sphi %s668_s9, %s844_s9  }
   0x9   : > { %s33_s17 = sadd.s32 1, %s642_s13  ;;  %s42_s18 = sadd.s32 1, %s634_s11 }
   0xa   : > { %p35_p0 = scmp.ge.s32.totalorder %s33_s17, 2  ;;  %p49_p1 = scmp.ne.s32.totalorder %s634_s11, %s630_s10 }
   0xb   : > { %p50_p2 = scmp.eq.s32.totalorder %s646_s14, 0  ;;  %p55_p3 = scmp.ne.s32.totalorder %s630_s10, %s626_s9 }
   0xc   : > { %s850_s17 = smov (%p35_p0, %s33_s17), 0  ;;  %p56_p5 = scmp.eq.s32.totalorder %s400_s15, 0 }
   0xd   : > { %p709_p4 = por %p50_p2, %p49_p1  ;;  %s37_s20 = ssub.s32 %s642_s13, %s850_s17 }
   0xe   : > { %p109_p6 = scmp.eq.s32.totalorder %s400_s15, 1  ;;  %p40_p7 = scmp.eq.s32.totalorder %s37_s20, 0 }
   0xf   : > { %p715_p8 = por %p56_p5, %p55_p3  ;;  %p115_p10 = scmp.eq.s32.totalorder %s401_s16, 1 }
  0x10   : > { %p719_p9 = por %p109_p6, %p49_p1  ;;  %p442_p13 = scmp.lt.s32.totalorder %s646_s14, 2 }
  0x11   : > { %s724_s23 = scalar_select %p40_p7, %s634_s11, %s42_s18  }
  0x12   : > { %p726_p11 = por %p115_p10, %p55_p3  ;;  %s733_s25 = sand.u32 1, %s634_s11  }
  0x13   : > { %s404_s26 = sshll.u32 %s733_s25, 3  ;;  %s422_s27 = sshll.u32 %s642_s13, 7 }
  0x14   : > { %s147_s30 = scalar_lea.hbm %s834_s0, %s422_s27  ;;  %s139_s3 = scalar_lea.vmem [#allocation2], %s404_s26 }
  0x15   : > { %s148_s4 = sshll.u32 %s139_s3, 4  ;;  %p742_p0 = pnand %p442_p13, %p709_p4  ;;  %s149_s4 = int_to_ptr.vmem [resolvable:$true] %s148_s4 }
  0x16   : > { %p410_p1 = scmp.ge.s32.totalorder %s646_s14, 1  ;;  %s136_s6 = scalar_lea.sflag [#allocation3], %s733_s25 }
  0x17   : > { %p508_p2 = pneg %p742_p0  ;;  %s519_s7 = scalar_lea.vmem %s149_s4, 128 }
  0x18   : > { %p520_p3 = scmp.ne.s32.totalorder %s149_s4, %s519_s7  ;;  %s648_s8 = smov [#allocation2]  }
  0x19   : > { %s524_s15 = sshll.u32 %s648_s8, 4  ;;  %s525_s15 = int_to_ptr.vmem [resolvable:$false] %s524_s15 }
  0x1a   : > { %p522_p5 = pnand %p520_p3, %p508_p2  ;;  %s526_s16 = scalar_lea.vmem %s525_s15, 256 }
  0x1b   : > { %p527_p4 = scmp.lt.s32.totalorder %s149_s4, %s525_s15  ;;  %p528_p7 = scmp.lt.s32.totalorder %s526_s16, %s519_s7 }
  0x1c   : > { %p523_p6 = pneg %p522_p5 }
  0x1d   : > { %p529_p10 = por %p528_p7, %p527_p4 }
  0x1f   : > { %p530_p13 = pnand %p529_p10, %p523_p6 }
  0x21   : > { %533 = shalt.err (!%p530_p13)
}
  0x22   : > { %s649_s18 = smov 32   ;;  %s650_s19 = smov 2  }
  0x23   : > { %434 = dma.hbm_to_vmem [thread:$0]  (!%p742_p0), %s147_s30, 128, %s149_s4, %s136_s6, %s649_s18, %s649_s18, %s650_s19  }
  0x24   : > { %p177_p3 = scmp.lt.s32.totalorder %s646_s14, 3  ;;  %s407_s20 = sshll.u32 %s733_s25, 1 }
  0x25   : > { %s423_s26 = sshll.u32 %s642_s13, 5  ;;  %s162_s7 = scalar_lea.vmem [#allocation5], %s407_s20 }
  0x26   : > { %p760_p5 = pnand %p410_p1, %p177_p3  ;;  %s170_s3 = scalar_lea.hbm %s835_s1, %s423_s26 }
  0x27   : > { %s172_s8 = sshll.u32 %s162_s7, 4  ;;  %s159_s15 = scalar_lea.sflag [#allocation6], %s733_s25  ;;  %s173_s8 = int_to_ptr.vmem [resolvable:$true] %s172_s8 }
  0x28   : > { %s547_s16 = scalar_lea.vmem %s173_s8, 32  ;;  %s651_s30 = smov [#allocation5]  }
  0x29   : > { %p548_p6 = scmp.ne.s32.totalorder %s173_s8, %s547_s16  ;;  %s552_s4 = sshll.u32 %s651_s30, 4  ;;  %s553_s4 = int_to_ptr.vmem [resolvable:$false] %s552_s4 }
  0x2a   : > { %s554_s6 = scalar_lea.vmem %s553_s4, 64  ;;  %p555_p1 = scmp.lt.s32.totalorder %s173_s8, %s553_s4 }
  0x2b   : > { %p550_p4 = pnand %p548_p6, %p508_p2  ;;  %p556_p10 = scmp.lt.s32.totalorder %s554_s6, %s547_s16 }
  0x2d   : > { %p551_p7 = pneg %p550_p4  ;;  %p557_p13 = por %p556_p10, %p555_p1 }
  0x2f   : > { %p558_p3 = pnand %p557_p13, %p551_p7 }
  0x31   : > { %561 = shalt.err (!%p558_p3)
}
  0x32   : > { %437 = dma.hbm_to_vmem [thread:$0]  (!%p742_p0), %s170_s3, 32, %s173_s8, %s159_s15  }
  0x33   : > { %181 = sbr.rel (%p760_p5) target bundleno = 149 (0x95), region = 28  ;;  %s776_s25 = sand.u32 (!%p760_p5), 1, %s630_s10  }
  0x34   : > { %s411_s18 = sshll.u32 (!%p760_p5), %s776_s25, 3  ;;  %s184_s19 = scalar_lea.sflag (!%p760_p5), [#allocation3], %s776_s25 }
  0x35   : > { %s187_s20 = scalar_lea.vmem (!%p760_p5), [#allocation2], %s411_s18 }
  0x38   : > { %613 = dma.done.wait (%p715_p8), %s184_s19, 128  }
  0x39   : > { %615 = vsyncadd (%p715_p8), %s184_s19, 4294967168  ;;  %s412_s5 = sshll.u32 %s776_s25, 1  ;;  %s193_s26 = scalar_lea.sflag [#allocation6], %s776_s25 }
  0x3a   : > { %s196_s27 = scalar_lea.vmem [#allocation5], %s412_s5 }
  0x3b   : > { %617 = dma.done.wait (%p715_p8), %s193_s26, 32  }
  0x3c   : > { %619 = vsyncadd (%p715_p8), %s193_s26, 4294967264  ;;  %v223_v0 = vld [vmem:[%s187_s20] sm:$0x3]  ;;  %v414_v1 = vld [vmem:[%s187_s20 + $0x2] sm:$0x3]  ;;  %v268_v34 = vlaneseq  ;;  %s221_s21 = scalar_lea.vmem [#allocation7], %s412_s5 }
  0x3d   : > { %v226_v2 = vmax.f32 %v223_v0, %v414_v1  ;;  %v415_v3 = vld [vmem:[%s187_s20 + $0x4] sm:$0x3]  ;;  %v416_v4 = vld [vmem:[%s187_s20 + $0x6] sm:$0x3]  ;;  %v222_v21 = vld [vmem:[%s196_s27] sm:$0x3] }
  0x3e   : > { %vm237_vm0 = vcmp.eq.s32.totalorder %v222_v21, 0  ;;  %vm243_vm1 = vcmp.eq.s32.totalorder %v222_v21, 1  ;;  %vm249_vm2 = vcmp.eq.s32.totalorder %v222_v21, 2  ;;  %vm255_vm3 = vcmp.eq.s32.totalorder %v222_v21, 3  ;;  %s290_s28 = sshll.u32 %s221_s21, 4  ;;  %s424_s29 = sshll.u32 %s638_s12, 5  ;;  %s291_s28 = int_to_ptr.vmem [resolvable:$true] %s290_s28 }
  0x3f   : > { %v229_v5 = vmax.f32 %v226_v2, %v415_v3  ;;  %vm270_vm4 = vcmp.lt.s32.totalorder %v268_v34, 256  ;;  %s288_s8 = scalar_lea.hbm %s836_s2, %s424_s29  ;;  %s274_s15 = scalar_lea.sflag [#allocation4], %s776_s25 }
  0x40   : > { %s562_s16 = scalar_lea.vmem %s291_s28, 32  ;;  %s652_s30 = smov [#allocation7]  }
  0x41   : > { %v232_v6 = vmax.f32 %v229_v5, %v416_v4  ;;  %p563_p8 = scmp.ne.s32.totalorder %s291_s28, %s562_s16  ;;  %s566_s4 = sshll.u32 %s652_s30, 4  ;;  %s567_s4 = int_to_ptr.vmem [resolvable:$false] %s566_s4 }
  0x42   : > { %s568_s6 = scalar_lea.vmem %s567_s4, 64  ;;  %p569_p5 = scmp.lt.s32.totalorder %s291_s28, %s567_s4 }
  0x43   : > { %v233_v7 = vsub.f32 %v223_v0, %v232_v6  ;;  %v239_v8 = vsub.f32 %v414_v1, %v232_v6  ;;  %v245_v9 = vsub.f32 %v415_v3, %v232_v6  ;;  %v251_v10 = vsub.f32 %v416_v4, %v232_v6  ;;  %p564_p0 = pnand %p563_p8, %p719_p9  ;;  %p570_p6 = scmp.lt.s32.totalorder %s568_s6, %s562_s16 }
  0x45   : > { %v234_v11 = vmul.f32 1.442695, %v233_v7  ;;  %v240_v12 = vmul.f32 1.442695, %v239_v8  ;;  %v246_v13 = vmul.f32 1.442695, %v245_v9  ;;  %p565_p2 = pneg %p564_p0  ;;  %p571_p4 = por %p570_p6, %p569_p5 }
  0x46   : > { %v252_v14 = vmul.f32 1.442695, %v251_v10  ;;  %v238_v23 = vsel %vm237_vm0, %v233_v7, 0.0 }
  0x47   : > { %494 = vpow2.f32 %v234_v11  ;;  %v244_v24 = vsel %vm243_vm1, %v239_v8, %v238_v23  ;;  %p572_p7 = pnand %p571_p4, %p565_p2 }
  0x48   : > { %496 = vpow2.f32 %v240_v12  ;;  %v250_v25 = vsel %vm249_vm2, %v245_v9, %v244_v24 }
  0x49   : > { %498 = vpow2.f32 %v246_v13  ;;  %v256_v27 = vsel %vm255_vm3, %v251_v10, %v250_v25 }
  0x4a   : > { %500 = vpow2.f32 %v252_v14 }
  0x54   : > { %v495_v15 = vpop.eup %494 }
  0x55   : > { %v497_v16 = vpop.eup %496 }
  0x56   : > { %v499_v17 = vpop.eup %498  ;;  %v242_v18 = vadd.f32 %v497_v16, %v495_v15 }
  0x57   : > { %v501_v19 = vpop.eup %500 }
  0x58   : > { %v248_v20 = vadd.f32 %v499_v17, %v242_v18 }
  0x5a   : > { %v254_v22 = vadd.f32 %v501_v19, %v248_v20 }
  0x5c   : > { %502 = vlog2.f32 %v254_v22 }
  0x69   : > { %v503_v26 = vpop.eup %502 }
  0x6a   : > { %v258_v28 = vmul.f32 0.6931472, %v503_v26 }
  0x6c   : > { %v259_v29 = vsub.f32 %v258_v28, %v256_v27 }
  0x6e   : > { %v260_v30 = vsub.f32 0.0, %v259_v29 }
  0x70   : > { %v261_v31 = vmul.f32 1.442695, %v260_v30 }
  0x72   : > { %504 = vpow2.f32 %v261_v31 }
  0x7f   : > { %v505_v32 = vpop.eup %504 }
  0x80   : > { %v263_v33 = vsub.f32 1.0, %v505_v32 }
  0x82   : > { %v264_v35 = vmax.f32 %v263_v33, 0.0 }
  0x84   : > { %v265_v36 = vmul.f32 %v264_v35, %v264_v35 }
  0x86   : > { %v266_v37 = vmul.f32 %v265_v36, %v259_v29 }
  0x88   : > { %272 = vst.msk [vmem:[%s221_s21] sm:$0x3] %vm270_vm4, %v266_v37 }
  0x89   : > { %575 = shalt.err (!%p572_p7)
}
  0x8a   : > { %s576_s12 = scalar_lea.hbm %s288_s8, 32  ;;  %s580_s19 = scalar_lea.hbm %s836_s2, 64 }
  0x8b   : > { %p577_p1 = scmp.ne.s32.totalorder %s288_s8, %s576_s12  ;;  %p581_p3 = scmp.lt.s32.totalorder %s288_s8, %s836_s2 }
  0x8c   : > { %p582_p8 = scmp.lt.s32.totalorder %s580_s19, %s576_s12 }
  0x8d   : > { %p578_p10 = pnand %p577_p1, %p719_p9 }
  0x8e   : > { %p583_p0 = por %p582_p8, %p581_p3 }
  0x8f   : > { %p579_p13 = pneg %p578_p10 }
  0x91   : > { %p584_p12 = pnand %p583_p0, %p579_p13 }
  0x93   : > { %587 = shalt.err (!%p584_p12)
}
  0x94   : > { %429 = dma.vmem_to_hbm [thread:$0]  (%p719_p9), %s291_s28, 32, %s288_s8, %s274_s15  }
  0x95 PF: > { %s302_s26 = sand.u32 1, %s626_s9   ;;  %p843_p2 = scmp.ge.s32.totalorder %s646_s14, 2 }
  0x96   : > { %s303_s27 = scalar_lea.sflag [#allocation4], %s302_s26 }
  0x97   : > { %p439_p5 = pnand %p843_p2, %p726_p11 }
  0x99   : > { %p440_p6 = pneg %p439_p5 }
  0x9b   : > { %621 = dma.done.wait (%p440_p6), %s303_s27, 32  }
  0x9c   : > { %623 = vsyncadd (%p440_p6), %s303_s27, 4294967264  ;;  %s21_s14 = sadd.s32 1, %s646_s14   ;;  %s844_s9 = smov %s630_s10 }
  0x9d   : > { %p18_p4 = scmp.ge.s32.totalorder %s21_s14, 4   ;;  %s845_s10 = smov %s634_s11 }
  0x9e   : > { %s846_s11 = smov %s724_s23  ;;  %s847_s12 = smov %s642_s13 }
  0x9f   : > { %s848_s13 = smov %s850_s17  ;;  %20 = sbr.rel (!%p18_p4) target bundleno = 8 (0x8), region = 89 }
  0xa4   :  { %308 = vsyncpa [#allocation3], 1 }
  0xa5   :  { %310 = vsyncpa [#allocation3 + $0x1], 1 }
  0xa6   :  { %311 = vsyncpa [#allocation6], 1 }
  0xa7   :  { %313 = vsyncpa [#allocation6 + $0x1], 1 }
  0xa8   :  { %314 = vsyncpa [#allocation4], 1 }
  0xa9   :  { %316 = vsyncpa [#allocation4 + $0x1], 1 }

</bundles_post_ra>
